<compile_context>
chip_gen: v5e
topology: v5e:2x2
jax: 0.10.0
libtpu: 0.0.40
codegen_flags: <defaults>
</compile_context>

<pallas_src>
import jax
import jax.numpy as jnp
from jax import lax
from jax.experimental import pallas as pl
from jax.experimental.pallas import tpu as pltpu

BN_EPS = 1e-3


def _resize_cell0_kernel(x_ref, h_ref, m_ref, wl_ref, wr_ref,
                         gl_ref, bl_ref, gr_ref, br_ref,
                         x_out_ref, h_out_ref, pooled_ref):
    """One grid step = one sublane-aligned block of output channels.

    Shapes seen by the kernel (all f32; lanes = flattened (batch, spatial)):
      x_ref : (Cx, N*S)       S  = H*W
      h_ref : (Ch, N*S)
      m_ref : (S, S2)         S2 = Ho*Wo, constant 0/1 pool-selection matrix
      wl_ref: (Cob, Ch)       wr_ref: (Cob, Cx)
      g*/b* : (Cob, 1)
      x_out_ref : (Cob, N*S)      h_out_ref : (Cob, N*S2)
      pooled_ref: (Ch, N*S2)      VMEM scratch
    """
    s, s2 = m_ref.shape
    n_batch = x_ref.shape[1] // s

    # ---- right branch: relu -> 1x1 conv, batch folded into the lane axis -----
    y_r = jnp.dot(wr_ref[...], jnp.maximum(x_ref[...], 0.0),
                  preferred_element_type=jnp.float32)             # (Cob, N*S)

    # ---- left branch: relu -> avgpool(3, s=2, p=1) -> 1x1 conv ---------------
    # Pooling only mixes spatial positions, so it is applied per sample; the
    # per-sample results land side by side in a VMEM scratch so the conv matmul
    # and the final store stay lane-dense.
    for b in range(n_batch):
        hr_b = jnp.maximum(h_ref[:, b * s:(b + 1) * s], 0.0)      # (Ch, S)
        pooled_ref[:, b * s2:(b + 1) * s2] = jnp.dot(
            hr_b, m_ref[...], preferred_element_type=jnp.float32) * (1.0 / 9.0)
    y_l = jnp.dot(wl_ref[...], pooled_ref[...],
                  preferred_element_type=jnp.float32)             # (Cob, N*S2)

    # ---- fused training-mode BatchNorm (batch stats, biased variance) --------
    # Two-pass centered variance: robust against E[y^2]-E[y]^2 cancellation.
    def bn_store(y, gamma, beta, out_ref):
        inv_count = 1.0 / y.shape[-1]
        mean = y.sum(axis=-1, keepdims=True) * inv_count          # (Cob, 1)
        d = y - mean
        var = (d * d).sum(axis=-1, keepdims=True) * inv_count
        scale = gamma * lax.rsqrt(var + BN_EPS)                   # EUP rsqrt
        out_ref[...] = (d * scale + beta).astype(out_ref.dtype)   # lane-dense

    bn_store(y_r, gr_ref[...], br_ref[...], x_out_ref)
    bn_store(y_l, gl_ref[...], bl_ref[...], h_out_ref)


def _pool_matrix(h_in, w_in, h_out, w_out):
    # AvgPool2d(3, stride=2, padding=1), count_include_pad=True: output (ho, wo)
    # sums input rows/cols in {2*ho-1, 2*ho, 2*ho+1} (clipped to the image);
    # zero pads contribute nothing and the divisor is always 9 (applied in the
    # kernel).
    sel_h = (jnp.abs(jnp.arange(h_in)[:, None] - 2 * jnp.arange(h_out)[None, :]) <= 1)
    sel_w = (jnp.abs(jnp.arange(w_in)[:, None] - 2 * jnp.arange(w_out)[None, :]) <= 1)
    m = jnp.einsum('ho,wp->hwop',
                   sel_h.astype(jnp.float32), sel_w.astype(jnp.float32))
    return m.reshape(h_in * w_in, h_out * w_out)


def resize_cell0_forward(x_nchw, h_nchw, w_left, w_right, gl, bl, gr, br):
    """x_nchw: (N, Cx, H, W), h_nchw: (N, Ch, H, W).
    w_left: (Ch, Co) = [W0 | W1] concatenated, w_right: (Cx, Co).
    Returns (x_out, h_out) in NCHW, matching the PyTorch module."""
    n, cx, hh, ww = x_nchw.shape
    _, ch, _, _ = h_nchw.shape
    co = w_right.shape[1]
    ho = (hh + 2 - 3) // 2 + 1
    wo = (ww + 2 - 3) // 2 + 1
    s, s2 = hh * ww, ho * wo

    # Split output channels across grid steps only when every block keeps full
    # 8-sublane occupancy; otherwise a split just wastes vregs, adds per-step
    # grid overhead, and duplicates the shared-input DMA + pool matmul per
    # block / per TensorCore.  Toy co = 8 -> nb = 1.
    nb = 2 if co % 16 == 0 else 1
    cob = co // nb

    f32 = jnp.float32
    # NCHW -> (C, N*H*W): one wrapper relayout.  Channels on sublanes, the
    # whole batch folded into the 128-lane axis -> lane-dense matmuls, BN
    # reductions, and output stores.
    x_flat = x_nchw.astype(f32).transpose(1, 0, 2, 3).reshape(cx, n * s)
    h_flat = h_nchw.astype(f32).transpose(1, 0, 2, 3).reshape(ch, n * s)
    m = _pool_matrix(hh, ww, ho, wo)                     # (S, S2), exact 0/1

    # TODO(synk): at real sizes, cast activations/weights to bf16 for the MXU
    # dots (keep f32 accumulation + BN); kept f32 here so the 2e-4 check
    # against the f32 reference holds without retuning tolerances.
    wl = w_left.astype(f32).T                            # (Co, Ch)
    wr = w_right.astype(f32).T                           # (Co, Cx)
    gl2 = gl.astype(f32).reshape(co, 1)
    bl2 = bl.astype(f32).reshape(co, 1)
    gr2 = gr.astype(f32).reshape(co, 1)
    br2 = br.astype(f32).reshape(co, 1)

    in_specs = [
        pl.BlockSpec((cx, n * s), lambda cb: (0, 0)),    # x (shared)
        pl.BlockSpec((ch, n * s), lambda cb: (0, 0)),    # h (shared, read once)
        pl.BlockSpec((s, s2), lambda cb: (0, 0)),        # pool matrix (shared)
        pl.BlockSpec((cob, ch), lambda cb: (cb, 0)),     # left conv weight block
        pl.BlockSpec((cob, cx), lambda cb: (cb, 0)),     # right conv weight block
        pl.BlockSpec((cob, 1), lambda cb: (cb, 0)),      # bn_left gamma
        pl.BlockSpec((cob, 1), lambda cb: (cb, 0)),      # bn_left beta
        pl.BlockSpec((cob, 1), lambda cb: (cb, 0)),      # bn_right gamma
        pl.BlockSpec((cob, 1), lambda cb: (cb, 0)),      # bn_right beta
    ]
    out_specs = (
        pl.BlockSpec((cob, n * s), lambda cb: (cb, 0)),  # x branch (lane-dense)
        pl.BlockSpec((cob, n * s2), lambda cb: (cb, 0)), # h branch (lane-dense)
    )
    out_shape = (
        jax.ShapeDtypeStruct((co, n * s), f32),
        jax.ShapeDtypeStruct((co, n * s2), f32),
    )

    x2, h2 = pl.pallas_call(
        _resize_cell0_kernel,
        grid=(nb,),
        in_specs=in_specs,
        out_specs=out_specs,
        out_shape=out_shape,
        scratch_shapes=[pltpu.VMEM((ch, n * s2), f32)],  # pooled intermediate
        compiler_params=pltpu.CompilerParams(
            dimension_semantics=("parallel",)),
    )(x_flat, h_flat, m, wl, wr, gl2, bl2, gr2, br2)

    # (Co, N*S) -> NCHW: reshape + one wrapper transpose per output.
    x_out = x2.reshape(co, n, hh, ww).transpose(1, 0, 2, 3)
    h_out = h2.reshape(co, n, ho, wo).transpose(1, 0, 2, 3)
    return x_out, h_out


# ----------------------------- pure-JAX reference ------------------------------
def _bn_ref(y_nchw, gamma, beta):
    mean = jnp.mean(y_nchw, axis=(0, 2, 3), keepdims=True)
    var = jnp.mean((y_nchw - mean) ** 2, axis=(0, 2, 3), keepdims=True)
    return ((y_nchw - mean) / jnp.sqrt(var + BN_EPS)
            * gamma.reshape(1, -1, 1, 1) + beta.reshape(1, -1, 1, 1))


def resize_cell0_reference(x, h, w_left, w_right, gl, bl, gr, br):
    hr = jax.nn.relu(h)
    summed = lax.reduce_window(hr, 0.0, lax.add, (1, 1, 3, 3), (1, 1, 2, 2),
                               [(0, 0), (0, 0), (1, 1), (1, 1)])
    pooled = summed / 9.0
    h_out = _bn_ref(jnp.einsum('nchw,cd->ndhw', pooled, w_left), gl, bl)
    xr = jax.nn.relu(x)
    x_out = _bn_ref(jnp.einsum('nchw,cd->ndhw', xr, w_right), gr, br)
    return x_out, h_out


if __name__ == "__main__":
    key = jax.random.PRNGKey(0)
    k = jax.random.split(key, 8)
    N, Cx, Ch, Co, H, W = 2, 4, 6, 8, 16, 16

    x = jax.random.normal(k[0], (N, Cx, H, W), jnp.float32)
    h = jax.random.normal(k[1], (N, Ch, H, W), jnp.float32)

    # Deterministic synthetic parameters (shapes from the module __init__).
    w_left0 = 0.1 * jax.random.normal(k[2], (Ch, Co // 2), jnp.float32)  # conv_left_0
    w_left1 = 0.1 * jax.random.normal(k[3], (Ch, Co // 2), jnp.float32)  # conv_left_1
    w_left = jnp.concatenate([w_left0, w_left1], axis=1)                 # (Ch, Co)
    w_right = 0.1 * jax.random.normal(k[4], (Cx, Co), jnp.float32)       # conv_right
    gl = 1.0 + 0.1 * jax.random.normal(k[5], (Co,), jnp.float32)         # bn_left weight
    bl = 0.1 * jax.random.normal(k[6], (Co,), jnp.float32)               # bn_left bias
    gr = jnp.ones((Co,), jnp.float32)                                    # bn_right weight
    br = jnp.zeros((Co,), jnp.float32)                                   # bn_right bias

    fwd = jax.jit(resize_cell0_forward)
    x_out, h_out = fwd(x, h, w_left, w_right, gl, bl, gr, br)
    jax.block_until_ready((x_out, h_out))

    x_ref, h_ref = resize_cell0_reference(x, h, w_left, w_right, gl, bl, gr, br)
    assert x_out.shape == (N, Co, H, W)
    assert h_out.shape == (N, Co, H // 2, W // 2)
    assert jnp.allclose(x_out, x_ref, atol=2e-4, rtol=2e-4)
    assert jnp.allclose(h_out, h_ref, atol=2e-4, rtol=2e-4)
    print("KERNEL_OK")
</pallas_src>

<mosaic_0001>
module attributes {stable_mosaic.version = 11 : i64} {
  func.func @_resize_cell0_kernel(%arg0: i32, %arg1: memref<4x512xf32, #tpu.memory_space<vmem>>, %arg2: memref<6x512xf32, #tpu.memory_space<vmem>>, %arg3: memref<256x64xf32, #tpu.memory_space<vmem>>, %arg4: memref<8x6xf32, #tpu.memory_space<vmem>>, %arg5: memref<8x4xf32, #tpu.memory_space<vmem>>, %arg6: memref<8x1xf32, #tpu.memory_space<vmem>>, %arg7: memref<8x1xf32, #tpu.memory_space<vmem>>, %arg8: memref<8x1xf32, #tpu.memory_space<vmem>>, %arg9: memref<8x1xf32, #tpu.memory_space<vmem>>, %arg10: memref<8x512xf32, #tpu.memory_space<vmem>>, %arg11: memref<8x128xf32, #tpu.memory_space<vmem>>, %arg12: memref<6x128xf32, #tpu.memory_space<vmem>>) attributes {dimension_semantics = [#tpu.dimension_semantics<parallel>], iteration_bounds = array<i64: 1>, scalar_prefetch = 0 : i64, scratch_operands = 1 : i64, tpu.core_type = #tpu.core_type<tc>, window_params = [{pipeline_mode = #tpu.pipeline_mode<synchronous>, transform_indices = @transform_0, window_bounds = array<i64: 4, 512>}, {pipeline_mode = #tpu.pipeline_mode<synchronous>, transform_indices = @transform_1, window_bounds = array<i64: 6, 512>}, {pipeline_mode = #tpu.pipeline_mode<synchronous>, transform_indices = @transform_2, window_bounds = array<i64: 256, 64>}, {transform_indices = @transform_3, window_bounds = array<i64: 8, 6>}, {transform_indices = @transform_4, window_bounds = array<i64: 8, 4>}, {transform_indices = @transform_5, window_bounds = array<i64: 8, 1>}, {transform_indices = @transform_6, window_bounds = array<i64: 8, 1>}, {transform_indices = @transform_7, window_bounds = array<i64: 8, 1>}, {transform_indices = @transform_8, window_bounds = array<i64: 8, 1>}, {transform_indices = @transform_9, window_bounds = array<i64: 8, 512>}, {transform_indices = @transform_10, window_bounds = array<i64: 8, 128>}]} {
    %c0 = arith.constant 0 : index
    %c0_0 = arith.constant 0 : index
    %0 = vector.load %arg5[%c0, %c0_0] : memref<8x4xf32, #tpu.memory_space<vmem>>, vector<8x4xf32>
    %c0_1 = arith.constant 0 : index
    %c0_2 = arith.constant 0 : index
    %1 = vector.load %arg1[%c0_1, %c0_2] : memref<4x512xf32, #tpu.memory_space<vmem>>, vector<4x512xf32>
    %cst = arith.constant 0.000000e+00 : f32
    %2 = vector.broadcast %cst : f32 to vector<4x512xf32>
    %3 = arith.maximumf %1, %2 : vector<4x512xf32>
    %cst_3 = arith.constant dense<0.000000e+00> : vector<8x512xf32>
    %4 = tpu.matmul %0, %3, %cst_3 {dimension_numbers = #tpu.dot_dimension_numbers<[1], [0], [0], [1], [0, 0, 1, 1], [], []>} : vector<8x4xf32>, vector<4x512xf32>, vector<8x512xf32> -> vector<8x512xf32>
    %c0_4 = arith.constant 0 : index
    %c0_5 = arith.constant 0 : index
    %5 = vector.load %arg2[%c0_4, %c0_5] : memref<6x512xf32, #tpu.memory_space<vmem>>, vector<6x256xf32>
    %cst_6 = arith.constant 0.000000e+00 : f32
    %6 = vector.broadcast %cst_6 : f32 to vector<6x256xf32>
    %7 = arith.maximumf %5, %6 : vector<6x256xf32>
    %c0_7 = arith.constant 0 : index
    %c0_8 = arith.constant 0 : index
    %8 = vector.load %arg3[%c0_7, %c0_8] : memref<256x64xf32, #tpu.memory_space<vmem>>, vector<256x64xf32>
    %cst_9 = arith.constant dense<0.000000e+00> : vector<6x64xf32>
    %9 = tpu.matmul %7, %8, %cst_9 {dimension_numbers = #tpu.dot_dimension_numbers<[1], [0], [0], [1], [0, 0, 1, 1], [], []>} : vector<6x256xf32>, vector<256x64xf32>, vector<6x64xf32> -> vector<6x64xf32>
    %cst_10 = arith.constant 0.111111112 : f32
    %10 = vector.broadcast %cst_10 : f32 to vector<6x64xf32>
    %11 = arith.mulf %9, %10 : vector<6x64xf32>
    %c0_11 = arith.constant 0 : index
    %c0_12 = arith.constant 0 : index
    %12 = vector.load %arg12[%c0_11, %c0_12] : memref<6x128xf32, #tpu.memory_space<vmem>>, vector<6x64xf32>
    tpu.vector_store %arg12[%c0_11, %c0_12], %11 {strides = array<i32>} : memref<6x128xf32, #tpu.memory_space<vmem>>, vector<6x64xf32>,
    %c0_13 = arith.constant 0 : index
    %c256 = arith.constant 256 : index
    %13 = vector.load %arg2[%c0_13, %c256] : memref<6x512xf32, #tpu.memory_space<vmem>>, vector<6x256xf32>
    %cst_14 = arith.constant 0.000000e+00 : f32
    %14 = vector.broadcast %cst_14 : f32 to vector<6x256xf32>
    %15 = arith.maximumf %13, %14 : vector<6x256xf32>
    %c0_15 = arith.constant 0 : index
    %c0_16 = arith.constant 0 : index
    %16 = vector.load %arg3[%c0_15, %c0_16] : memref<256x64xf32, #tpu.memory_space<vmem>>, vector<256x64xf32>
    %cst_17 = arith.constant dense<0.000000e+00> : vector<6x64xf32>
    %17 = tpu.matmul %15, %16, %cst_17 {dimension_numbers = #tpu.dot_dimension_numbers<[1], [0], [0], [1], [0, 0, 1, 1], [], []>} : vector<6x256xf32>, vector<256x64xf32>, vector<6x64xf32> -> vector<6x64xf32>
    %cst_18 = arith.constant 0.111111112 : f32
    %18 = vector.broadcast %cst_18 : f32 to vector<6x64xf32>
    %19 = arith.mulf %17, %18 : vector<6x64xf32>
    %c0_19 = arith.constant 0 : index
    %c64 = arith.constant 64 : index
    %20 = vector.load %arg12[%c0_19, %c64] : memref<6x128xf32, #tpu.memory_space<vmem>>, vector<6x64xf32>
    tpu.vector_store %arg12[%c0_19, %c64], %19 {strides = array<i32>} : memref<6x128xf32, #tpu.memory_space<vmem>>, vector<6x64xf32>,
    %c0_20 = arith.constant 0 : index
    %c0_21 = arith.constant 0 : index
    %21 = vector.load %arg4[%c0_20, %c0_21] : memref<8x6xf32, #tpu.memory_space<vmem>>, vector<8x6xf32>
    %c0_22 = arith.constant 0 : index
    %c0_23 = arith.constant 0 : index
    %22 = vector.load %arg12[%c0_22, %c0_23] : memref<6x128xf32, #tpu.memory_space<vmem>>, vector<6x128xf32>
    %cst_24 = arith.constant dense<0.000000e+00> : vector<8x128xf32>
    %23 = tpu.matmul %21, %22, %cst_24 {dimension_numbers = #tpu.dot_dimension_numbers<[1], [0], [0], [1], [0, 0, 1, 1], [], []>} : vector<8x6xf32>, vector<6x128xf32>, vector<8x128xf32> -> vector<8x128xf32>
    %c0_25 = arith.constant 0 : index
    %c0_26 = arith.constant 0 : index
    %24 = vector.load %arg8[%c0_25, %c0_26] : memref<8x1xf32, #tpu.memory_space<vmem>>, vector<8x1xf32>
    %c0_27 = arith.constant 0 : index
    %c0_28 = arith.constant 0 : index
    %25 = vector.load %arg9[%c0_27, %c0_28] : memref<8x1xf32, #tpu.memory_space<vmem>>, vector<8x1xf32>
    %cst_29 = arith.constant dense<0.000000e+00> : vector<8xf32>
    %26 = vector.multi_reduction <add>, %4, %cst_29 [1] : vector<8x512xf32> to vector<8xf32>
    %27 = vector.shape_cast %26 : vector<8xf32> to vector<8x1xf32>
    %cst_30 = arith.constant 0.001953125 : f32
    %28 = vector.broadcast %cst_30 : f32 to vector<8x1xf32>
    %29 = arith.mulf %27, %28 : vector<8x1xf32>
    %30 = vector.broadcast %29 : vector<8x1xf32> to vector<8x512xf32>
    %31 = arith.subf %4, %30 : vector<8x512xf32>
    %32 = arith.mulf %31, %31 : vector<8x512xf32>
    %cst_31 = arith.constant dense<0.000000e+00> : vector<8xf32>
    %33 = vector.multi_reduction <add>, %32, %cst_31 [1] : vector<8x512xf32> to vector<8xf32>
    %34 = vector.shape_cast %33 : vector<8xf32> to vector<8x1xf32>
    %cst_32 = arith.constant 0.001953125 : f32
    %35 = vector.broadcast %cst_32 : f32 to vector<8x1xf32>
    %36 = arith.mulf %34, %35 : vector<8x1xf32>
    %cst_33 = arith.constant 1.000000e-03 : f32
    %37 = vector.broadcast %cst_33 : f32 to vector<8x1xf32>
    %38 = arith.addf %36, %37 : vector<8x1xf32>
    %39 = math.rsqrt %38 : vector<8x1xf32>
    %40 = arith.mulf %24, %39 : vector<8x1xf32>
    %41 = vector.broadcast %40 : vector<8x1xf32> to vector<8x512xf32>
    %42 = arith.mulf %31, %41 : vector<8x512xf32>
    %43 = vector.broadcast %25 : vector<8x1xf32> to vector<8x512xf32>
    %44 = arith.addf %42, %43 : vector<8x512xf32>
    %c0_34 = arith.constant 0 : index
    %c0_35 = arith.constant 0 : index
    %45 = vector.load %arg10[%c0_34, %c0_35] : memref<8x512xf32, #tpu.memory_space<vmem>>, vector<8x512xf32>
    tpu.vector_store %arg10[%c0_34, %c0_35], %44 {strides = array<i32>} : memref<8x512xf32, #tpu.memory_space<vmem>>, vector<8x512xf32>,
    %c0_36 = arith.constant 0 : index
    %c0_37 = arith.constant 0 : index
    %46 = vector.load %arg6[%c0_36, %c0_37] : memref<8x1xf32, #tpu.memory_space<vmem>>, vector<8x1xf32>
    %c0_38 = arith.constant 0 : index
    %c0_39 = arith.constant 0 : index
    %47 = vector.load %arg7[%c0_38, %c0_39] : memref<8x1xf32, #tpu.memory_space<vmem>>, vector<8x1xf32>
    %cst_40 = arith.constant dense<0.000000e+00> : vector<8xf32>
    %48 = vector.multi_reduction <add>, %23, %cst_40 [1] : vector<8x128xf32> to vector<8xf32>
    %49 = vector.shape_cast %48 : vector<8xf32> to vector<8x1xf32>
    %cst_41 = arith.constant 7.812500e-03 : f32
    %50 = vector.broadcast %cst_41 : f32 to vector<8x1xf32>
    %51 = arith.mulf %49, %50 : vector<8x1xf32>
    %52 = vector.broadcast %51 : vector<8x1xf32> to vector<8x128xf32>
    %53 = arith.subf %23, %52 : vector<8x128xf32>
    %54 = arith.mulf %53, %53 : vector<8x128xf32>
    %cst_42 = arith.constant dense<0.000000e+00> : vector<8xf32>
    %55 = vector.multi_reduction <add>, %54, %cst_42 [1] : vector<8x128xf32> to vector<8xf32>
    %56 = vector.shape_cast %55 : vector<8xf32> to vector<8x1xf32>
    %cst_43 = arith.constant 7.812500e-03 : f32
    %57 = vector.broadcast %cst_43 : f32 to vector<8x1xf32>
    %58 = arith.mulf %56, %57 : vector<8x1xf32>
    %cst_44 = arith.constant 1.000000e-03 : f32
    %59 = vector.broadcast %cst_44 : f32 to vector<8x1xf32>
    %60 = arith.addf %58, %59 : vector<8x1xf32>
    %61 = math.rsqrt %60 : vector<8x1xf32>
    %62 = arith.mulf %46, %61 : vector<8x1xf32>
    %63 = vector.broadcast %62 : vector<8x1xf32> to vector<8x128xf32>
    %64 = arith.mulf %53, %63 : vector<8x128xf32>
    %65 = vector.broadcast %47 : vector<8x1xf32> to vector<8x128xf32>
    %66 = arith.addf %64, %65 : vector<8x128xf32>
    %c0_45 = arith.constant 0 : index
    %c0_46 = arith.constant 0 : index
    %67 = vector.load %arg11[%c0_45, %c0_46] : memref<8x128xf32, #tpu.memory_space<vmem>>, vector<8x128xf32>
    tpu.vector_store %arg11[%c0_45, %c0_46], %66 {strides = array<i32>} : memref<8x128xf32, #tpu.memory_space<vmem>>, vector<8x128xf32>,
    return
  }
  func.func @transform_0(%arg0: i32) -> (i32, i32) {
    %c0_i32 = arith.constant 0 : i32
    %c0_i32_0 = arith.constant 0 : i32
    %c0_i32_1 = arith.constant 0 : i32
    return %c0_i32, %c0_i32_0 : i32, i32
  }
  func.func @transform_1(%arg0: i32) -> (i32, i32) {
    %c0_i32 = arith.constant 0 : i32
    %c0_i32_0 = arith.constant 0 : i32
    %c0_i32_1 = arith.constant 0 : i32
    return %c0_i32, %c0_i32_0 : i32, i32
  }
  func.func @transform_2(%arg0: i32) -> (i32, i32) {
    %c0_i32 = arith.constant 0 : i32
    %c0_i32_0 = arith.constant 0 : i32
    %c0_i32_1 = arith.constant 0 : i32
    return %c0_i32, %c0_i32_0 : i32, i32
  }
  func.func @transform_3(%arg0: i32) -> (i32, i32) {
    %c0_i32 = arith.constant 0 : i32
    %c0_i32_0 = arith.constant 0 : i32
    return %arg0, %c0_i32 : i32, i32
  }
  func.func @transform_4(%arg0: i32) -> (i32, i32) {
    %c0_i32 = arith.constant 0 : i32
    %c0_i32_0 = arith.constant 0 : i32
    return %arg0, %c0_i32 : i32, i32
  }
  func.func @transform_5(%arg0: i32) -> (i32, i32) {
    %c0_i32 = arith.constant 0 : i32
    %c0_i32_0 = arith.constant 0 : i32
    return %arg0, %c0_i32 : i32, i32
  }
  func.func @transform_6(%arg0: i32) -> (i32, i32) {
    %c0_i32 = arith.constant 0 : i32
    %c0_i32_0 = arith.constant 0 : i32
    return %arg0, %c0_i32 : i32, i32
  }
  func.func @transform_7(%arg0: i32) -> (i32, i32) {
    %c0_i32 = arith.constant 0 : i32
    %c0_i32_0 = arith.constant 0 : i32
    return %arg0, %c0_i32 : i32, i32
  }
  func.func @transform_8(%arg0: i32) -> (i32, i32) {
    %c0_i32 = arith.constant 0 : i32
    %c0_i32_0 = arith.constant 0 : i32
    return %arg0, %c0_i32 : i32, i32
  }
  func.func @transform_9(%arg0: i32) -> (i32, i32) {
    %c0_i32 = arith.constant 0 : i32
    %c0_i32_0 = arith.constant 0 : i32
    return %arg0, %c0_i32 : i32, i32
  }
  func.func @transform_10(%arg0: i32) -> (i32, i32) {
    %c0_i32 = arith.constant 0 : i32
    %c0_i32_0 = arith.constant 0 : i32
    return %arg0, %c0_i32 : i32, i32
  }
}

</mosaic_0001>

<bundles_post_ra>
// kernel: resize_cell0_forward.1
= control target key start
LH: loop header
LB: loop body
LE: loop exit
PB: predicated region body
PF: predicated region fallthrough
CT: control target
= control target key end

     0   :  { %vm52_vm0 = vcmask 1043456   ;;  %vm48_vm1 = vcmask 31744   ;;  %s451_s23 = smov 64   ;;  %vm218_vm2 = vcmask 521216   ;;  %vm301_vm3 = vcmask 1046016   ;;  %s663_s0 = inlined_call_operand.vmem [shape: f32[4,512], index: 0, kind: input, shape index: {}]   ;;  %s664_s2 = inlined_call_operand.vmem [shape: f32[256,64], index: 2, kind: input, shape index: {}]   ;;  %s665_s4 = inlined_call_operand.vmem [shape: f32[8,4], index: 4, kind: input, shape index: {}]   ;;  %s666_s1 = inlined_call_operand.vmem [shape: f32[6,512], index: 1, kind: input, shape index: {}]   ;;  %s667_s3 = inlined_call_operand.vmem [shape: f32[8,6], index: 3, kind: input, shape index: {}]   ;;  %s668_s7 = inlined_call_operand.vmem [shape: f32[8,1], index: 7, kind: input, shape index: {}]   ;;  %s669_s8 = inlined_call_operand.vmem [shape: f32[8,1], index: 8, kind: input, shape index: {}]   ;;  %s670_s6 = inlined_call_operand.vmem [shape: f32[8,1], index: 6, kind: input, shape index: {}]   ;;  %s671_s9 = inlined_call_operand.vmem [shape: f32[8,512], index: 9, kind: output, shape index: {0}]   ;;  %s672_s5 = inlined_call_operand.vmem [shape: f32[8,1], index: 5, kind: input, shape index: {}]   ;;  %s673_s10 = inlined_call_operand.vmem [shape: f32[8,128], index: 10, kind: output, shape index: {1}]  }
   0x1   :  { %v36_v0 = vld [vmem:[%s663_s0 + $0x8] sm:$0xff]  ;;  %v35_v2 = vld [vmem:[%s663_s0] sm:$0xff]  ;;  %v239_v3 = vld [vmem:[%s664_s2 + $0x78] sm:$0xff]  ;;  %vm309_vm4 = vcmask 1045504   ;;  %vm305_vm5 = vcmask 48128  }
   0x2   :  { %v38_v1 = vmax.f32 %v36_v0, 0.0  ;;  %v255_v4 = vld [vmem:[%s664_s2 + $0xf8] sm:$0xff]  ;;  %v34_v5 = vld [vmem:[%s665_s4] sm:$0xff]  ;;  %v37_v6 = vmax.f32 %v35_v2, 0.0  ;;  %v238_v9 = vld [vmem:[%s664_s2 + $0x70] sm:$0xff] }
   0x3   :  { %v254_v10 = vld [vmem:[%s664_s2 + $0xf0] sm:$0xff]  ;;  %v237_v11 = vld [vmem:[%s664_s2 + $0x68] sm:$0xff]  ;;  %v236_v13 = vld [vmem:[%s664_s2 + $0x60] sm:$0xff] }
   0x4   :  { %43 = vst [vmem:[#allocation1 + $0x10] ss:$2 sm:$0xff] %v38_v1  ;;  %v253_v12 = vld [vmem:[%s664_s2 + $0xe8] sm:$0xff]  ;;  %v252_v14 = vld [vmem:[%s664_s2 + $0xe0] sm:$0xff]  ;;  %v235_v15 = vld [vmem:[%s664_s2 + $0x58] sm:$0xff] }
   0x5   :  { %41 = vst [vmem:[#allocation1] ss:$2 sm:$0xff] %v37_v6  ;;  %v251_v16 = vld [vmem:[%s664_s2 + $0xd8] sm:$0xff]  ;;  %v234_v19 = vld [vmem:[%s664_s2 + $0x50] sm:$0xff]  ;;  %v233_v21 = vld [vmem:[%s664_s2 + $0x48] sm:$0xff] }
   0x6   :  { %v250_v20 = vld [vmem:[%s664_s2 + $0xd0] sm:$0xff]  ;;  %v249_v22 = vld [vmem:[%s664_s2 + $0xc8] sm:$0xff]  ;;  %v232_v23 = vld [vmem:[%s664_s2 + $0x40] sm:$0xff] }
   0x7   :  { %v248_v24 = vld [vmem:[%s664_s2 + $0xc0] sm:$0xff]  ;;  %v231_v25 = vld [vmem:[%s664_s2 + $0x38] sm:$0xff]  ;;  %v230_v27 = vld [vmem:[%s664_s2 + $0x30] sm:$0xff] }
   0x8   :  { %v247_v26 = vld [vmem:[%s664_s2 + $0xb8] sm:$0xff]  ;;  %v246_v28 = vld [vmem:[%s664_s2 + $0xb0] sm:$0xff]  ;;  %v229_v29 = vld [vmem:[%s664_s2 + $0x28] sm:$0xff] }
   0x9   :  { %v245_v30 = vld [vmem:[%s664_s2 + $0xa8] sm:$0xff]  ;;  %v228_v31 = vld [vmem:[%s664_s2 + $0x20] sm:$0xff]  ;;  %v227_v33 = vld [vmem:[%s664_s2 + $0x18] sm:$0xff] }
   0xa   :  { %v244_v32 = vld [vmem:[%s664_s2 + $0xa0] sm:$0xff]  ;;  %v243_v34 = vld [vmem:[%s664_s2 + $0x98] sm:$0xff]  ;;  %v226_v35 = vld [vmem:[%s664_s2 + $0x10] sm:$0xff] }
   0xb   :  { %v46_v7 = vld.sshfl [vmem:[#allocation1 + $0x10] sm:$0xff pattern:$0x75316420]  ;;  %v47_v8 = vld.sshfl [vmem:[#allocation1 + $0x18] sm:$0xff pattern:$0x75316420] }
   0xc   :  { %436 = vmatpush.msk.msra.mxu2 %vm52_vm0, %v46_v7  ;;  %438 = vmatpush.msk.msra.mxu3 %vm52_vm0, %v47_v8  ;;  %v44_v17 = vld.sshfl [vmem:[#allocation1] sm:$0xff pattern:$0x75316420]  ;;  %v45_v18 = vld.sshfl [vmem:[#allocation1 + $0x8] sm:$0xff pattern:$0x75316420] }
   0xd   :  { %437 = vmatmul.msk.f32.vlgmr.msra.gmra.mxu2 %vm48_vm1, %v34_v5  ;;  %439 = vmatmul.msk.f32.vlgmr.msra.gmra.mxu3 %vm48_vm1, %v34_v5  ;;  %v242_v36 = vld [vmem:[%s664_s2 + $0x90] sm:$0xff]  ;;  %v221_v38 = vld [vmem:[%s666_s1 + $0x18] sm:$0x3f]  ;;  %v225_v39 = vld [vmem:[%s664_s2 + $0x8] sm:$0xff] }
   0xe   :  { %256 = vmatpush.msrb.mxu2 %v239_v3  ;;  %276 = vmatpush.msrb.mxu3 %v255_v4  ;;  %v220_v37 = vld [vmem:[%s666_s1 + $0x10] sm:$0x3f]  ;;  %v241_v40 = vld [vmem:[%s664_s2 + $0x88] sm:$0xff]  ;;  %v224_v41 = vld [vmem:[%s664_s2] sm:$0xff]  ;;  %v223_v44 = vmax.f32 %v221_v38, 0.0 }
   0xf   :  { %432 = vmatpush.msk.msra.mxu0 %vm52_vm0, %v44_v17  ;;  %434 = vmatpush.msk.msra.mxu1 %vm52_vm0, %v45_v18  ;;  %v240_v42 = vld [vmem:[%s664_s2 + $0x80] sm:$0xff]  ;;  %v222_v43 = vmax.f32 %v220_v37, 0.0  ;;  %v142_v46 = vld [vmem:[%s666_s1 + $0x8] sm:$0x3f]  ;;  %v452_v17 = vmov 0  }
  0x10   :  { %257 = vmatpush.msrb.mxu2 %v238_v9  ;;  %277 = vmatpush.msrb.mxu3 %v254_v10  ;;  %v141_v45 = vld [vmem:[%s666_s1] sm:$0x3f]  ;;  %v144_v48 = vmax.f32 %v142_v46, 0.0 }
  0x11   :  { %433 = vmatmul.msk.f32.vlgmr.msra.gmra.mxu0 %vm48_vm1, %v34_v5  ;;  %435 = vmatmul.msk.f32.vlgmr.msra.gmra.mxu1 %vm48_vm1, %v34_v5  ;;  %v143_v47 = vmax.f32 %v141_v45, 0.0  ;;  %v303_v1 = vld [vmem:[%s667_s3] sm:$0xff] }
  0x12   :  { %258 = vmatpush.msrb.mxu2 %v237_v11  ;;  %278 = vmatpush.msrb.mxu3 %v253_v12 }
  0x13   :  { %177 = vmatpush.msrb.mxu0 %v239_v3  ;;  %197 = vmatpush.msrb.mxu1 %v255_v4 }
  0x14   :  { %259 = vmatpush.msrb.mxu2 %v236_v13  ;;  %279 = vmatpush.msrb.mxu3 %v252_v14 }
  0x15   :  { %178 = vmatpush.msrb.mxu0 %v238_v9  ;;  %198 = vmatpush.msrb.mxu1 %v254_v10 }
  0x16   :  { %260 = vmatpush.msrb.mxu2 %v235_v15  ;;  %280 = vmatpush.msrb.mxu3 %v251_v16 }
  0x17   :  { %179 = vmatpush.msrb.mxu0 %v237_v11  ;;  %199 = vmatpush.msrb.mxu1 %v253_v12 }
  0x18   :  { %261 = vmatpush.msrb.mxu2 %v234_v19  ;;  %281 = vmatpush.msrb.mxu3 %v250_v20 }
  0x19   :  { %180 = vmatpush.msrb.mxu0 %v236_v13  ;;  %200 = vmatpush.msrb.mxu1 %v252_v14 }
  0x1a   :  { %262 = vmatpush.msrb.mxu2 %v233_v21  ;;  %282 = vmatpush.msrb.mxu3 %v249_v22 }
  0x1b   :  { %181 = vmatpush.msrb.mxu0 %v235_v15  ;;  %201 = vmatpush.msrb.mxu1 %v251_v16 }
  0x1c   :  { %263 = vmatpush.msrb.mxu2 %v232_v23  ;;  %283 = vmatpush.msrb.mxu3 %v248_v24 }
  0x1d   :  { %182 = vmatpush.msrb.mxu0 %v234_v19  ;;  %202 = vmatpush.msrb.mxu1 %v250_v20 }
  0x1e   :  { %264 = vmatpush.msrb.mxu2 %v231_v25  ;;  %284 = vmatpush.msrb.mxu3 %v247_v26 }
  0x1f   :  { %183 = vmatpush.msrb.mxu0 %v233_v21  ;;  %203 = vmatpush.msrb.mxu1 %v249_v22 }
  0x20   :  { %265 = vmatpush.msrb.mxu2 %v230_v27  ;;  %285 = vmatpush.msrb.mxu3 %v246_v28 }
  0x21   :  { %184 = vmatpush.msrb.mxu0 %v232_v23  ;;  %204 = vmatpush.msrb.mxu1 %v248_v24 }
  0x22   :  { %266 = vmatpush.msrb.mxu2 %v229_v29  ;;  %286 = vmatpush.msrb.mxu3 %v245_v30 }
  0x23   :  { %185 = vmatpush.msrb.mxu0 %v231_v25  ;;  %205 = vmatpush.msrb.mxu1 %v247_v26 }
  0x24   :  { %267 = vmatpush.msrb.mxu2 %v228_v31  ;;  %287 = vmatpush.msrb.mxu3 %v244_v32 }
  0x25   :  { %186 = vmatpush.msrb.mxu0 %v230_v27  ;;  %206 = vmatpush.msrb.mxu1 %v246_v28 }
  0x26   :  { %268 = vmatpush.msrb.mxu2 %v227_v33  ;;  %288 = vmatpush.msrb.mxu3 %v243_v34 }
  0x27   :  { %187 = vmatpush.msrb.mxu0 %v229_v29  ;;  %207 = vmatpush.msrb.mxu1 %v245_v30  ;;  %v333_v30 = vld [vmem:[%s668_s7] sm:$0xff] }
  0x28   :  { %269 = vmatpush.msrb.mxu2 %v226_v35  ;;  %289 = vmatpush.msrb.mxu3 %v242_v36 }
  0x29   :  { %188 = vmatpush.msrb.mxu0 %v228_v31  ;;  %208 = vmatpush.msrb.mxu1 %v244_v32 }
  0x2a   :  { %270 = vmatpush.msrb.mxu2 %v225_v39  ;;  %290 = vmatpush.msrb.mxu3 %v241_v40 }
  0x2b   :  { %189 = vmatpush.msrb.mxu0 %v227_v33  ;;  %209 = vmatpush.msrb.mxu1 %v243_v34  ;;  %v334_v34 = vld [vmem:[%s669_s8] sm:$0xff] }
  0x2c   :  { %271 = vmatpush.msrb.mxu2 %v224_v41  ;;  %291 = vmatpush.msrb.mxu3 %v240_v42 }
  0x2d   :  { %272 = vmatmul.f32.vlgmr.msrb.gmra.mxu2 %v222_v43  ;;  %292 = vmatmul.f32.vlgmr.msrb.gmra.mxu3 %v223_v44 }
  0x2e   :  { %190 = vmatpush.msrb.mxu0 %v226_v35  ;;  %210 = vmatpush.msrb.mxu1 %v242_v36  ;;  %v390_v35 = vld [vmem:[%s670_s6] sm:$0xff] }
  0x2f   :  { %444 = vset.pattern.permute.xlu2 %v452_v17  ;;  %445 = vset.pattern.permute.xlu1 %v452_v17 }
  0x30   :  { %191 = vmatpush.msrb.mxu0 %v225_v39  ;;  %211 = vmatpush.msrb.mxu1 %v241_v40 }
  0x31   :  { %446 = vset.pattern.permute.xlu0 %v452_v17 }
  0x32   :  { %192 = vmatpush.msrb.mxu0 %v224_v41  ;;  %212 = vmatpush.msrb.mxu1 %v240_v42 }
  0x33   :  { %193 = vmatmul.f32.vlgmr.msrb.gmra.mxu0 %v143_v47  ;;  %213 = vmatmul.f32.vlgmr.msrb.gmra.mxu1 %v144_v48 }
  0x8e   :  { %v78_v55 = vpop.f32.mrf.mxu0  ;;  %v98_v56 = vpop.f32.mrf.mxu1 }
  0x8f   :  { %v335_v57 = vadd.f32 %v98_v56, %v78_v55 }
  0x90   :  { %v138_v49 = vpop.f32.mrf.mxu3  ;;  %v118_v50 = vpop.f32.mrf.mxu2 }
  0x91   :  { %v336_v58 = vadd.f32 %v335_v57, %v118_v50 }
  0x93   :  { %v337_v59 = vadd.f32 %v336_v58, %v138_v49 }
  0xb0   :  { %v273_v51 = vpop.f32.mrf.mxu2  ;;  %v293_v52 = vpop.f32.mrf.mxu3 }
  0xb1   :  { %v294_v53 = vadd.f32 %v293_v52, %v273_v51  ;;  %v194_v60 = vpop.f32.mrf.mxu0  ;;  %v214_v61 = vpop.f32.mrf.mxu1 }
  0xb2   :  { %v215_v62 = vadd.f32 %v214_v61, %v194_v60 }
  0xb3   :  { %v296_v54 = vmul.f32 0.11111111, %v294_v53 }
  0xb4   :  { %v217_v63 = vmul.f32 0.11111111, %v215_v62 }
  0xb5   :  { %298 = vrot.lane.b32.xlu0 %v296_v54, %s451_s23  ;;  %v389_v54 = vld [vmem:[%s672_s5] sm:$0xff] }
  0xb6   :  { %219 = vst.msk [vmem:[#allocation2] sm:$0x3f] %vm218_vm2, %v217_v63 }
  0xdf   :  { %338 = vadd.xlane.f32.xlu0 %v337_v59 }
 0x127   :  { %v299_v0 = vpop.permute.xlu0 %298 }
 0x128   :  { %302 = vst.msk [vmem:[#allocation2] sm:$0x3f] %vm301_vm3, %v299_v0 }
 0x12f   :  { %v304_v2 = vld [vmem:[#allocation2] sm:$0x3f] }
 0x130   :  { %440 = vmatpush.msk.msra.mxu0 %vm309_vm4, %v304_v2 }
 0x131   :  { %441 = vmatmul.msk.f32.vlgmr.msra.gmra.mxu0 %vm305_vm5, %v303_v1 }
 0x152   :  { %v339_v3 = vpop.xlane.xlu0 %338 }
 0x153   :  { %v340_v4 = vmul.f32 0.001953125, %v339_v3 }
 0x155   :  { %v341_v5 = vsub.f32 %v78_v55, %v340_v4  ;;  %v342_v6 = vsub.f32 %v98_v56, %v340_v4  ;;  %v343_v9 = vsub.f32 %v118_v50, %v340_v4  ;;  %v344_v12 = vsub.f32 %v138_v49, %v340_v4 }
 0x157   :  { %v345_v7 = vmul.f32 %v341_v5, %v341_v5  ;;  %v346_v8 = vmul.f32 %v342_v6, %v342_v6  ;;  %v347_v13 = vmul.f32 %v343_v9, %v343_v9  ;;  %v348_v15 = vmul.f32 %v344_v12, %v344_v12 }
 0x159   :  { %v349_v10 = vadd.f32 %v346_v8, %v345_v7 }
 0x15b   :  { %v350_v14 = vadd.f32 %v349_v10, %v347_v13 }
 0x15d   :  { %v351_v16 = vadd.f32 %v350_v14, %v348_v15 }
 0x1ae   :  { %v330_v11 = vpop.f32.mrf.mxu0 }
 0x1af   :  { %391 = vadd.xlane.f32.xlu1 %v330_v11 }
 0x1b7   :  { %352 = vadd.xlane.f32.xlu1 %v351_v16 }
 0x222   :  { %v392_v18 = vpop.xlane.xlu1 %391 }
 0x223   :  { %v393_v19 = vmul.f32 0.0078125, %v392_v18 }
 0x225   :  { %v394_v20 = vsub.f32 %v330_v11, %v393_v19 }
 0x227   :  { %v395_v21 = vmul.f32 %v394_v20, %v394_v20 }
 0x229   :  { %396 = vadd.xlane.f32.xlu2 %v395_v21 }
 0x22a   :  { %v353_v22 = vpop.xlane.xlu1 %352 }
 0x22b   :  { %v354_v23 = vmul.f32 0.001953125, %v353_v22 }
 0x22d   :  { %v355_v24 = vadd.f32 0.001, %v354_v23 }
 0x22f   :  { %447 = vrsqrt.f32 %v355_v24  ;;  %vm362_vm7 = vweird.f32 %v355_v24 }
 0x235   :  { %v448_v25 = vpop.eup %447 }
 0x236   :  { %v357_v26 = vmul.f32 %v448_v25, %v355_v24  ;;  %vm363_vm6 = vweird.f32 %v448_v25 }
 0x237   :  { %vm364_vm8 = vmor %vm362_vm7, %vm363_vm6 }
 0x238   :  { %v358_v27 = vmul.f32 %v448_v25, %v357_v26 }
 0x23a   :  { %v359_v28 = vmul.f32 0.5, %v358_v27 }
 0x23c   :  { %v360_v29 = vsub.f32 1.5, %v359_v28 }
 0x23e   :  { %v361_v31 = vmul.f32 %v448_v25, %v360_v29 }
 0x240   :  { %v365_v32 = vsel %vm364_vm8, %v448_v25, %v361_v31 }
 0x241   :  { %v366_v33 = vmul.f32 %v365_v32, %v333_v30 }
 0x243   :  { %369 = vperm.xlu2 %444, %v366_v33  }
 0x24b   :  { %378 = vperm.xlu2 %444, %v334_v34  }
 0x253   :  { %419 = vperm.xlu2 %444, %v390_v35  }
 0x29c   :  { %v397_v36 = vpop.xlane.xlu2 %396 }
 0x29d   :  { %v398_v37 = vmul.f32 0.0078125, %v397_v36 }
 0x29f   :  { %v399_v38 = vadd.f32 0.001, %v398_v37 }
 0x2a1   :  { %449 = vrsqrt.f32 %v399_v38  ;;  %vm406_vm10 = vweird.f32 %v399_v38 }
 0x2a4   :  { %v370_v39 = vpop.permute.xlu2 %369 }
 0x2a5   :  { %v372_v43 = vmul.f32 %v370_v39, %v341_v5  ;;  %v373_v44 = vmul.f32 %v370_v39, %v342_v6  ;;  %v374_v45 = vmul.f32 %v370_v39, %v343_v9  ;;  %v375_v47 = vmul.f32 %v370_v39, %v344_v12 }
 0x2a7   :  { %v450_v40 = vpop.eup %449 }
 0x2a8   :  { %v401_v41 = vmul.f32 %v450_v40, %v399_v38  ;;  %vm407_vm9 = vweird.f32 %v450_v40 }
 0x2a9   :  { %vm408_vm11 = vmor %vm406_vm10, %vm407_vm9 }
 0x2aa   :  { %v402_v42 = vmul.f32 %v450_v40, %v401_v41 }
 0x2ac   :  { %v403_v46 = vmul.f32 0.5, %v402_v42  ;;  %v379_v48 = vpop.permute.xlu2 %378 }
 0x2ad   :  { %v381_v49 = vadd.f32 %v379_v48, %v372_v43  ;;  %v382_v50 = vadd.f32 %v379_v48, %v373_v44  ;;  %v383_v51 = vadd.f32 %v379_v48, %v374_v45  ;;  %v384_v53 = vadd.f32 %v379_v48, %v375_v47 }
 0x2ae   :  { %v404_v52 = vsub.f32 1.5, %v403_v46 }
 0x2af   :  { %385 = vst [vmem:[%s671_s9] sm:$0xff] %v381_v49 }
 0x2b0   :  { %386 = vst [vmem:[%s671_s9 + $0x8] sm:$0xff] %v382_v50  ;;  %v405_v55 = vmul.f32 %v450_v40, %v404_v52 }
 0x2b1   :  { %387 = vst [vmem:[%s671_s9 + $0x10] sm:$0xff] %v383_v51 }
 0x2b2   :  { %388 = vst [vmem:[%s671_s9 + $0x18] sm:$0xff] %v384_v53  ;;  %v409_v56 = vsel %vm408_vm11, %v450_v40, %v405_v55 }
 0x2b3   :  { %v410_v57 = vmul.f32 %v409_v56, %v389_v54 }
 0x2b4   :  { %v420_v60 = vpop.permute.xlu2 %419 }
 0x2b5   :  { %413 = vperm.xlu1 %445, %v410_v57  }
 0x327   :  { %v414_v58 = vpop.permute.xlu1 %413 }
 0x328   :  { %v416_v59 = vmul.f32 %v414_v58, %v394_v20 }
 0x32a   :  { %v422_v61 = vadd.f32 %v420_v60, %v416_v59 }
 0x32c   :  { %423 = vst [vmem:[%s673_s10] sm:$0xff] %v422_v61 }

</bundles_post_ra>
